<compile_context>
chip_gen: v5e
topology: v5e:2x2
jax: 0.10.0
libtpu: 0.0.40
codegen_flags: <defaults>
</compile_context>

<pallas_src>
import functools

import jax
import jax.numpy as jnp
from jax.experimental import pallas as pl
from jax.experimental.pallas import tpu as pltpu


def signed_minmax(bits):
    return -(2 ** (bits - 1)), 2 ** (bits - 1) - 1


# --------------------- call 1: fold + observer + quantize --------------------
def fold_quant_kernel(a_s_ref, norm_w_ref, norm_b_ref, fc1_w_ref, fc1_b_ref,
                      wT_ref, b_int_ref, bdeq_ref, b_s_ref, w_s_ref,
                      *, Qn, Qp, bQn, bQp):
    a_s = a_s_ref[0]

    # weight.T computed directly in (I, O) layout:
    #   wT[i, o] = sum_k norm_w[k, i] * fc1_w[o, k]
    wT = jax.lax.dot_general(norm_w_ref[...], fc1_w_ref[...],
                             (((0,), (1,)), ((), ())),
                             preferred_element_type=jnp.float32)           # (I, O)

    # bias = fc1_b + fc1_w @ norm_b   (computed as a (1, O) row)
    fold_b = jax.lax.dot_general(norm_b_ref[...], fc1_w_ref[...],
                                 (((1,), (1,)), ((), ())),
                                 preferred_element_type=jnp.float32)       # (1, O)
    bias = fc1_b_ref[...] + fold_b

    # LSQObserver(mode='minmax'), first calibration step.
    # TODO(synk): get_scale_func('minmax') source not provided; using symmetric
    #             max(|w|)/Qp (epsilon guards an all-zero fold).
    absmax = jnp.max(jnp.abs(wT), axis=(0, 1), keepdims=True)              # (1, 1)
    w_s = jnp.maximum(absmax, 1e-12) / Qp                                  # (1, 1)
    b_s = w_s * a_s                                                        # (1, 1)
    w_s_sc = w_s[0, 0]
    b_s_sc = b_s[0, 0]

    # round_pass / STE forward == plain round(clamp(.)).  bQp = 2^31-1 is not
    # exact in f32 (effectively clamps at 2^31), matching the PyTorch reference.
    w_int = jnp.round(jnp.clip(wT / w_s_sc, Qn, Qp))                       # (I, O)
    b_int = jnp.round(jnp.clip(bias / b_s_sc, bQn, bQp))                   # (1, O)

    # Quantized-weight values lie in [Qn, Qp] = [-128, 127] -> exact in bf16.
    wT_ref[...] = w_int.astype(jnp.bfloat16)
    b_int_ref[...] = b_int
    bdeq_ref[...] = b_int * b_s_sc        # pre-dequantized bias row for the epilogue
    b_s_ref[...] = b_s
    w_s_ref[...] = w_s


# ---------------------- call 2: streamed int-linear --------------------------
def stream_linear_kernel(w_s_ref, x_ref, wT_ref, bdeq_ref, out_ref):
    w_s = w_s_ref[0]                       # scalar from SMEM
    x_bf = x_ref[...].astype(jnp.bfloat16)                                  # (tm, I)
    acc = jnp.dot(x_bf, wT_ref[...], preferred_element_type=jnp.float32)    # (tm, O)
    # out = (x/a_s @ w_int.T + b_int) * b_s == (x @ w_int.T) * w_s + b_int * b_s
    out_ref[...] = acc * w_s + bdeq_ref[...]


# ------------------------------ sizing helpers --------------------------------
def _tpu_vmem_bytes():
    try:
        info = pltpu.get_tpu_info()
        for attr in ("vmem_capacity_bytes", "vmem_size_bytes", "vmem_bytes"):
            v = getattr(info, attr, None)
            if v:
                return int(v)
    except Exception:
        pass
    return 64 << 20                      # conservative fallback (v7x per-core VMEM)


def _pick_vmem_limit():
    phys = _tpu_vmem_bytes()
    # ~85% of physical leaves compiler headroom; never request more than 112 MiB.
    return int(min(phys * 0.85, 112 << 20))


def _default_tile_m(M, I, O, x_itemsize, vmem_limit):
    """Pick the largest sublane-aligned token tile whose double-buffered
    streamed tiles (x in, f32 out) fit next to the resident bf16 weight."""
    resident = 2 * I * O * 2 + 4 * O * 4 + (2 << 20)       # wT (x2 buffers) + rows + slack
    budget = max(vmem_limit - resident, 4 << 20)
    per_row = 2 * (I * x_itemsize + O * 4)                 # double-buffered x + out rows
    tm = budget // per_row
    return int(max(8, min(tm, 2048, M)))


# --------------------------------- wrapper ------------------------------------
def qcrosslayer1_forward(x, a_s, norm_w, norm_b, fc1_w, fc1_b,
                         to_bit=8, bias_bit=32, tile_m=None):
    B, N, I = x.shape
    O = fc1_w.shape[0]
    M = B * N
    Qn, Qp = signed_minmax(to_bit)
    bQn, bQp = signed_minmax(bias_bit)

    x2 = x.reshape(M, I)                         # keep input dtype; cast in-kernel
    a_s_arr = jnp.asarray(a_s, jnp.float32).reshape(1)
    norm_b2 = norm_b.reshape(1, I)
    fc1_b2 = fc1_b.reshape(1, O)

    vmem_limit = _pick_vmem_limit()
    smem = pl.BlockSpec(memory_space=pltpu.MemorySpace.SMEM)
    vmem = pl.BlockSpec(memory_space=pltpu.MemorySpace.VMEM)

    # ---- call 1: one-time fold / observer / quantization (no grid) ----------
    fold_kern = functools.partial(fold_quant_kernel,
                                  Qn=float(Qn), Qp=float(Qp),
                                  bQn=float(bQn), bQp=float(bQp))
    fold_cost = pl.CostEstimate(
        flops=2 * I * I * O + 2 * I * O,
        transcendentals=0,
        bytes_accessed=(I * I + O * I + I + O) * 4 + I * O * 2 + 2 * O * 4 + 12)

    wT_bf16, b_int, bias_deq, b_s, w_s = pl.pallas_call(
        fold_kern,
        out_shape=(jax.ShapeDtypeStruct((I, O), jnp.bfloat16),   # quantized weight (transposed)
                   jax.ShapeDtypeStruct((1, O), jnp.float32),    # b_int (module buffer)
                   jax.ShapeDtypeStruct((1, O), jnp.float32),    # b_int * b_s (epilogue row)
                   jax.ShapeDtypeStruct((1, 1), jnp.float32),    # b_s
                   jax.ShapeDtypeStruct((1, 1), jnp.float32)),   # w_s
        in_specs=[smem, vmem, vmem, vmem, vmem],
        out_specs=(vmem, vmem, vmem, vmem, vmem),
        compiler_params=pltpu.CompilerParams(vmem_limit_bytes=vmem_limit),
        cost_estimate=fold_cost,
    )(a_s_arr, norm_w, norm_b2, fc1_w, fc1_b2)

    # ---- call 2: streamed token-tiled int-linear (parallel grid) ------------
    if tile_m is None:
        tile_m = _default_tile_m(M, I, O, x2.dtype.itemsize, vmem_limit)
    tile_m = int(min(tile_m, M))
    if tile_m < M:
        tile_m = max(8, (tile_m // 8) * 8)       # sublane-aligned partial blocks
    grid_m = pl.cdiv(M, tile_m)

    stream_cost = pl.CostEstimate(
        flops=2 * M * I * O,
        transcendentals=0,
        bytes_accessed=M * I * x2.dtype.itemsize + I * O * 2 + O * 4 + 4 + M * O * 4)

    out2 = pl.pallas_call(
        stream_linear_kernel,
        out_shape=jax.ShapeDtypeStruct((M, O), jnp.float32),
        grid_spec=pltpu.PrefetchScalarGridSpec(
            num_scalar_prefetch=0,
            grid=(grid_m,),
            in_specs=[
                smem,                                            # w_s (scalar)
                pl.BlockSpec((tile_m, I), lambda i: (i, 0)),     # x (streamed)
                pl.BlockSpec((I, O), lambda i: (0, 0)),          # wT_int bf16 (resident)
                pl.BlockSpec((1, O), lambda i: (0, 0)),          # b_int*b_s row (resident)
            ],
            out_specs=pl.BlockSpec((tile_m, O), lambda i: (i, 0)),
        ),
        compiler_params=pltpu.CompilerParams(
            # no cross-step dependence anymore -> megacore-shardable on v7x.
            dimension_semantics=("parallel",),
            vmem_limit_bytes=vmem_limit,
        ),
        cost_estimate=stream_cost,
    )(w_s.reshape(1), x2, wT_bf16, bias_deq)

    # Module buffer w_int is (O, I) f32: bf16 holds the int8-range values
    # exactly, so this wrapper-side cast+transpose (off the hot path) is exact.
    w_int = wT_bf16.astype(jnp.float32).T
    return out2.reshape(B, N, O), b_s[0, 0], w_int, b_int.reshape(O)


# ------------------------------ reference ------------------------------------
def reference(x, a_s, norm_w, norm_b, fc1_w, fc1_b, to_bit=8, bias_bit=32):
    Qn, Qp = signed_minmax(to_bit)
    bQn, bQp = signed_minmax(bias_bit)
    x_q = x / a_s
    weight = fc1_w @ norm_w
    bias = fc1_b + fc1_w @ norm_b
    w_s = jnp.max(jnp.abs(weight)) / Qp
    b_s = w_s * a_s
    w_int = jnp.round(jnp.clip(weight / w_s, Qn, Qp))
    b_int = jnp.round(jnp.clip(bias / b_s, bQn, bQp))
    out = (jnp.einsum('bnd,od->bno', x_q, w_int) + b_int) * b_s
    return out, b_s, w_int, b_int


if __name__ == "__main__":
    # lane-dense sizes (multiples of 128), still small.
    B, N, D, H = 2, 64, 128, 256   # batch, tokens, in_features, out_features
    key = jax.random.PRNGKey(0)
    k1, k2, k3, k4, k5 = jax.random.split(key, 5)

    x = jax.random.normal(k1, (B, N, D), dtype=jnp.float32)
    a_s = jnp.float32(0.05)                                   # activation scale
    norm_w = jax.random.normal(k2, (D, D), dtype=jnp.float32) * 0.1
    norm_b = jax.random.normal(k3, (D,), dtype=jnp.float32) * 0.1
    fc1_w = jax.random.normal(k4, (H, D), dtype=jnp.float32) * 0.1
    fc1_b = jax.random.normal(k5, (H,), dtype=jnp.float32) * 0.1

    # tile_m=64 -> 2 grid steps: exercises the resident-weight streaming path.
    out, b_s, w_int, b_int = qcrosslayer1_forward(
        x, a_s, norm_w, norm_b, fc1_w, fc1_b, tile_m=64)
    jax.block_until_ready((out, b_s, w_int, b_int))

    out_r, b_s_r, w_int_r, b_int_r = reference(x, a_s, norm_w, norm_b, fc1_w, fc1_b)

    assert out.shape == (B, N, H)
    assert jnp.allclose(b_s, b_s_r, rtol=1e-4, atol=1e-8), "scale mismatch"
    # Quantized tensors: allow a handful of +/-1 round-boundary flips caused by
    # fp accumulation-order differences between the in-kernel (MXU) fold and
    # the XLA reference fold.
    assert float(jnp.max(jnp.abs(w_int - w_int_r))) <= 1.0, "w_int mismatch"
    assert float(jnp.mean((w_int != w_int_r).astype(jnp.float32))) <= 1e-3, "w_int flips"
    assert float(jnp.max(jnp.abs(b_int - b_int_r))) <= 1.0, "b_int mismatch"
    # Output: the streamed matmul uses bf16 activations (weight path is exact),
    # so tolerances are slightly looser than pure-f32 while remaining tight
    # relative to the unit output scale (~O(1)).
    assert float(jnp.mean(jnp.abs(out - out_r))) < 1e-2, "output mean error"
    assert jnp.allclose(out, out_r, rtol=5e-3, atol=5e-2), "output mismatch"

    print("KERNEL_OK")
</pallas_src>

<mosaic_0001>
module attributes {stable_mosaic.version = 11 : i64} {
  func.func @fold_quant_kernel(%arg0: memref<1xf32, #tpu.memory_space<smem>>, %arg1: memref<128x128xf32, #tpu.memory_space<vmem>>, %arg2: memref<1x128xf32, #tpu.memory_space<vmem>>, %arg3: memref<256x128xf32, #tpu.memory_space<vmem>>, %arg4: memref<1x256xf32, #tpu.memory_space<vmem>>, %arg5: memref<128x256xbf16, #tpu.memory_space<vmem>>, %arg6: memref<1x256xf32, #tpu.memory_space<vmem>>, %arg7: memref<1x256xf32, #tpu.memory_space<vmem>>, %arg8: memref<1x1xf32, #tpu.memory_space<vmem>>, %arg9: memref<1x1xf32, #tpu.memory_space<vmem>>) attributes {dimension_semantics = [], scalar_prefetch = 0 : i64, scratch_operands = 0 : i64, tpu.core_type = #tpu.core_type<tc>} {
    %c0 = arith.constant 0 : index
    %0 = memref.load %arg0[%c0] : memref<1xf32, #tpu.memory_space<smem>>
    %c0_0 = arith.constant 0 : index
    %c0_1 = arith.constant 0 : index
    %1 = vector.load %arg1[%c0_0, %c0_1] : memref<128x128xf32, #tpu.memory_space<vmem>>, vector<128x128xf32>
    %c0_2 = arith.constant 0 : index
    %c0_3 = arith.constant 0 : index
    %2 = vector.load %arg3[%c0_2, %c0_3] : memref<256x128xf32, #tpu.memory_space<vmem>>, vector<256x128xf32>
    %cst = arith.constant dense<0.000000e+00> : vector<128x256xf32>
    %3 = tpu.matmul %1, %2, %cst {dimension_numbers = #tpu.dot_dimension_numbers<[0], [1], [1], [0], [0, 1, 1, 0], [], []>} : vector<128x128xf32>, vector<256x128xf32>, vector<128x256xf32> -> vector<128x256xf32>
    %c0_4 = arith.constant 0 : index
    %c0_5 = arith.constant 0 : index
    %4 = vector.load %arg2[%c0_4, %c0_5] : memref<1x128xf32, #tpu.memory_space<vmem>>, vector<1x128xf32>
    %c0_6 = arith.constant 0 : index
    %c0_7 = arith.constant 0 : index
    %5 = vector.load %arg3[%c0_6, %c0_7] : memref<256x128xf32, #tpu.memory_space<vmem>>, vector<256x128xf32>
    %cst_8 = arith.constant dense<0.000000e+00> : vector<1x256xf32>
    %6 = tpu.matmul %4, %5, %cst_8 {dimension_numbers = #tpu.dot_dimension_numbers<[1], [1], [0], [0], [0, 0, 1, 0], [], []>} : vector<1x128xf32>, vector<256x128xf32>, vector<1x256xf32> -> vector<1x256xf32>
    %c0_9 = arith.constant 0 : index
    %c0_10 = arith.constant 0 : index
    %7 = vector.load %arg4[%c0_9, %c0_10] : memref<1x256xf32, #tpu.memory_space<vmem>>, vector<1x256xf32>
    %8 = arith.addf %7, %6 : vector<1x256xf32>
    %9 = math.absf %3 : vector<128x256xf32>
    %10 = vector.shape_cast %9 : vector<128x256xf32> to vector<1x128x256xf32>
    %cst_11 = arith.constant dense<0xFF800000> : vector<1xf32>
    %11 = vector.multi_reduction <maximumf>, %10, %cst_11 [1, 2] : vector<1x128x256xf32> to vector<1xf32>
    %12 = vector.shape_cast %11 : vector<1xf32> to vector<1x1x1xf32>
    %13 = vector.extract %12[0, 0, 0] : f32 from vector<1x1x1xf32>
    %14 = vector.broadcast %13 : f32 to vector<1x1xf32>
    %cst_12 = arith.constant 9.99999996E-13 : f32
    %15 = vector.broadcast %cst_12 : f32 to vector<1x1xf32>
    %16 = arith.maximumf %14, %15 : vector<1x1xf32>
    %cst_13 = arith.constant 1.270000e+02 : f32
    %17 = vector.broadcast %cst_13 : f32 to vector<1x1xf32>
    %18 = arith.divf %16, %17 : vector<1x1xf32>
    %19 = vector.broadcast %0 : f32 to vector<1x1xf32>
    %20 = arith.mulf %18, %19 : vector<1x1xf32>
    %21 = vector.extract %18[0, 0] : f32 from vector<1x1xf32>
    %22 = vector.extract %20[0, 0] : f32 from vector<1x1xf32>
    %23 = vector.broadcast %21 : f32 to vector<128x256xf32>
    %24 = arith.divf %3, %23 : vector<128x256xf32>
    %cst_14 = arith.constant -1.280000e+02 : f32
    %cst_15 = arith.constant 1.270000e+02 : f32
    %25 = vector.broadcast %cst_14 : f32 to vector<128x256xf32>
    %26 = arith.maximumf %25, %24 : vector<128x256xf32>
    %27 = vector.broadcast %cst_15 : f32 to vector<128x256xf32>
    %28 = arith.minimumf %27, %26 : vector<128x256xf32>
    %29 = math.roundeven %28 : vector<128x256xf32>
    %30 = vector.broadcast %22 : f32 to vector<1x256xf32>
    %31 = arith.divf %8, %30 : vector<1x256xf32>
    %cst_16 = arith.constant -2.14748365E+9 : f32
    %cst_17 = arith.constant 2.14748365E+9 : f32
    %32 = vector.broadcast %cst_16 : f32 to vector<1x256xf32>
    %33 = arith.maximumf %32, %31 : vector<1x256xf32>
    %34 = vector.broadcast %cst_17 : f32 to vector<1x256xf32>
    %35 = arith.minimumf %34, %33 : vector<1x256xf32>
    %36 = math.roundeven %35 : vector<1x256xf32>
    %37 = arith.truncf %29 : vector<128x256xf32> to vector<128x256xbf16>
    %c0_18 = arith.constant 0 : index
    %c0_19 = arith.constant 0 : index
    %38 = vector.load %arg5[%c0_18, %c0_19] : memref<128x256xbf16, #tpu.memory_space<vmem>>, vector<128x256xbf16>
    tpu.vector_store %arg5[%c0_18, %c0_19], %37 {strides = array<i32>} : memref<128x256xbf16, #tpu.memory_space<vmem>>, vector<128x256xbf16>,
    %c0_20 = arith.constant 0 : index
    %c0_21 = arith.constant 0 : index
    %39 = vector.load %arg6[%c0_20, %c0_21] : memref<1x256xf32, #tpu.memory_space<vmem>>, vector<1x256xf32>
    tpu.vector_store %arg6[%c0_20, %c0_21], %36 {strides = array<i32>} : memref<1x256xf32, #tpu.memory_space<vmem>>, vector<1x256xf32>,
    %40 = vector.broadcast %22 : f32 to vector<1x256xf32>
    %41 = arith.mulf %36, %40 : vector<1x256xf32>
    %c0_22 = arith.constant 0 : index
    %c0_23 = arith.constant 0 : index
    %42 = vector.load %arg7[%c0_22, %c0_23] : memref<1x256xf32, #tpu.memory_space<vmem>>, vector<1x256xf32>
    tpu.vector_store %arg7[%c0_22, %c0_23], %41 {strides = array<i32>} : memref<1x256xf32, #tpu.memory_space<vmem>>, vector<1x256xf32>,
    %c0_24 = arith.constant 0 : index
    %c0_25 = arith.constant 0 : index
    %43 = vector.load %arg8[%c0_24, %c0_25] : memref<1x1xf32, #tpu.memory_space<vmem>>, vector<1x1xf32>
    tpu.vector_store %arg8[%c0_24, %c0_25], %20 {strides = array<i32>} : memref<1x1xf32, #tpu.memory_space<vmem>>, vector<1x1xf32>,
    %c0_26 = arith.constant 0 : index
    %c0_27 = arith.constant 0 : index
    %44 = vector.load %arg9[%c0_26, %c0_27] : memref<1x1xf32, #tpu.memory_space<vmem>>, vector<1x1xf32>
    tpu.vector_store %arg9[%c0_26, %c0_27], %18 {strides = array<i32>} : memref<1x1xf32, #tpu.memory_space<vmem>>, vector<1x1xf32>,
    return
  }
}

</mosaic_0001>

<bundles_post_ra>
// kernel: tpu_custom_call.1
= control target key start
LH: loop header
LB: loop body
LE: loop exit
PB: predicated region body
PF: predicated region fallthrough
CT: control target
= control target key end

     0   :  { %16 = vsyncpa [#allocation4], 0  ;;  %s2211_s0 = inlined_call_operand.<no memory space> [shape: f32[1], index: 0, kind: input, shape index: {}]   ;;  %s2212_s1 = inlined_call_operand.hbm [shape: f32[128,128], index: 1, kind: input, shape index: {}]   ;;  %s2213_s2 = inlined_call_operand.vmem [shape: f32[1,128], index: 2, kind: input, shape index: {}]   ;;  %s2214_s3 = inlined_call_operand.hbm [shape: f32[256,128], index: 3, kind: input, shape index: {}]   ;;  %s2215_s4 = inlined_call_operand.vmem [shape: f32[1,256], index: 4, kind: input, shape index: {}]   ;;  %s2216_s5 = inlined_call_operand.hbm [shape: bf16[128,256], index: 5, kind: output, shape index: {0}]   ;;  %s2217_s6 = inlined_call_operand.hbm [shape: f32[1,256], index: 6, kind: output, shape index: {1}]   ;;  %s2218_s7 = inlined_call_operand.hbm [shape: f32[1,256], index: 7, kind: output, shape index: {2}]   ;;  %s2219_s8 = inlined_call_operand.hbm [shape: f32[1,1], index: 8, kind: output, shape index: {3}]   ;;  %s2220_s9 = inlined_call_operand.hbm [shape: f32[1,1], index: 9, kind: output, shape index: {4}]  }
   0x1   :  { %17 = vsyncpa [#allocation7], 0 }
   0x2   :  { %18 = vsyncpa [#allocation5], 0 }
   0x3   :  { %19 = vsyncpa [#allocation10], 0 }
   0x4   :  { %20 = vsyncpa [#allocation13], 0  ;;  %s27_s11 = sshll.u32 %s2212_s1, 4  ;;  %s1161_s12 = smov [#allocation3]   ;;  %s28_s11 = int_to_ptr.hbm [resolvable:$true] %s27_s11 }
   0x5   :  { %s29_s13 = sshll.u32 %s1161_s12, 4  ;;  %s42_s16 = sshll.u32 %s2214_s3, 4  ;;  %s30_s13 = int_to_ptr.vmem [resolvable:$true] %s29_s13  ;;  %s43_s16 = int_to_ptr.hbm [resolvable:$true] %s42_s16 }
   0x6   :  { %s1162_s17 = smov 128   ;;  %s1163_s18 = smov 8  }
   0x7   :  { %35 = dma.hbm_to_vmem [thread:$0]  %s28_s11, 2048, %s30_s13, [#allocation4], %s1162_s17, %s1162_s17, %s1163_s18  }
   0x8   :  { %s1164_s19 = smov [#allocation6]  }
   0x9   :  { %s44_s20 = sshll.u32 %s1164_s19, 4  ;;  %s45_s20 = int_to_ptr.vmem [resolvable:$true] %s44_s20 }
   0xa   :  { %50 = dma.hbm_to_vmem [thread:$0]  %s43_s16, 4096, %s45_s20, [#allocation7], %s1162_s17, %s1162_s17, %s1163_s18  }
   0xb   :  { %1151 = dma.done.wait [#allocation4], 2048  }
   0xc   :  { %1152 = vsyncadd [#allocation4], 4294965248 }
   0xd   :  { %1153 = dma.done.wait [#allocation7], 4096  }
   0xe   :  { %1154 = vsyncadd [#allocation7], 4294963200  ;;  %v62_v0 = vld [vmem:[#allocation3] sm:$0xff]  ;;  %v63_v1 = vld [vmem:[#allocation3 + $0x8] sm:$0xff]  ;;  %s1166_s23 = smov [#allocation12]   ;;  %s653_s27 = sshll.u32 %s2219_s8, 4  ;;  %s654_s27 = int_to_ptr.hbm [resolvable:$true] %s653_s27 }
   0xf   :  { %110 = vxpose.xlu0.b32.start [1/16] %v62_v0, 128  ;;  %v64_v2 = vld [vmem:[#allocation3 + $0x10] sm:$0xff]  ;;  %v65_v3 = vld [vmem:[#allocation3 + $0x18] sm:$0xff]  ;;  %v66_v4 = vld [vmem:[#allocation3 + $0x20] sm:$0xff]  ;;  %s651_s24 = sshll.u32 %s1166_s23, 4  ;;  %vm608_vm1 = vcmask 0   ;;  %s664_s30 = sshll.u32 %s2220_s9, 4  ;;  %s652_s24 = int_to_ptr.vmem [resolvable:$true] %s651_s24  ;;  %s665_s30 = int_to_ptr.hbm [resolvable:$true] %s664_s30 }
  0x10   :  { %v67_v5 = vld [vmem:[#allocation3 + $0x28] sm:$0xff]  ;;  %v68_v6 = vld [vmem:[#allocation3 + $0x30] sm:$0xff]  ;;  %v69_v7 = vld [vmem:[#allocation3 + $0x38] sm:$0xff]  ;;  %s1167_s10 = smov [#allocation14]   ;;  %vm317_vm5 = vcmask 1040384   ;;  %s631_s16 = sshll.u32 %s2217_s6, 4  ;;  %s632_s16 = int_to_ptr.hbm [resolvable:$true] %s631_s16 }
  0x11   :  { %v70_v8 = vld [vmem:[#allocation3 + $0x40] sm:$0xff]  ;;  %v93_v9 = vld [vmem:[#allocation6 + $0x78] sm:$0xff]  ;;  %v71_v11 = vld [vmem:[#allocation3 + $0x48] sm:$0xff]  ;;  %s662_s11 = sshll.u32 %s1167_s10, 4  ;;  %s1169_s19 = smov [#allocation11]   ;;  %s663_s11 = int_to_ptr.vmem [resolvable:$true] %s662_s11 }
  0x12   :  { %v109_v10 = vld [vmem:[#allocation6 + $0xf8] sm:$0xff]  ;;  %142 = vmatpush.xpose.msra.mxu0 %v93_v9  ;;  %273 = vmatpush.xpose.msra.mxu2 %v93_v9  ;;  %v92_v12 = vld [vmem:[#allocation6 + $0x70] sm:$0xff]  ;;  %v91_v14 = vld [vmem:[#allocation6 + $0x68] sm:$0xff]  ;;  %s1649_s6 = sshll.u32 %s1169_s19, 4  ;;  %s642_s3 = sshll.u32 %s2218_s7, 4  ;;  %s641_s6 = int_to_ptr.vmem [resolvable:$true] %s1649_s6  ;;  %s643_s3 = int_to_ptr.hbm [resolvable:$true] %s642_s3 }
  0x13   :  { %207 = vmatpush.xpose.msra.mxu1 %v109_v10  ;;  %293 = vmatpush.xpose.msra.mxu3 %v109_v10  ;;  %v108_v13 = vld [vmem:[#allocation6 + $0xf0] sm:$0xff]  ;;  %v107_v15 = vld [vmem:[#allocation6 + $0xe8] sm:$0xff]  ;;  %v90_v17 = vld [vmem:[#allocation6 + $0x60] sm:$0xff]  ;;  %s1170_s7 = smov [#allocation8]   ;;  %s617_s23 = sshll.u32 %s2216_s5, 4  ;;  %s618_s23 = int_to_ptr.hbm [resolvable:$true] %s617_s23 }
  0x14   :  { %v72_v16 = vld [vmem:[#allocation3 + $0x50] sm:$0xff]  ;;  %v106_v18 = vld [vmem:[#allocation6 + $0xe0] sm:$0xff]  ;;  %v89_v19 = vld [vmem:[#allocation6 + $0x58] sm:$0xff] }
  0x15   :  { %v105_v20 = vld [vmem:[#allocation6 + $0xd8] sm:$0xff]  ;;  %v88_v22 = vld [vmem:[#allocation6 + $0x50] sm:$0xff]  ;;  %v87_v24 = vld [vmem:[#allocation6 + $0x48] sm:$0xff] }
  0x16   :  { %143 = vmatpush.xpose.msra.mxu0 %v92_v12  ;;  %274 = vmatpush.xpose.msra.mxu2 %v92_v12  ;;  %v73_v21 = vld [vmem:[#allocation3 + $0x58] sm:$0xff]  ;;  %v104_v23 = vld [vmem:[#allocation6 + $0xd0] sm:$0xff]  ;;  %v103_v25 = vld [vmem:[#allocation6 + $0xc8] sm:$0xff] }
  0x17   :  { %111 = vxpose.xlu0.b32.cont [2/16] %v63_v1, 128  ;;  %208 = vmatpush.xpose.msra.mxu1 %v108_v13  ;;  %v74_v26 = vld [vmem:[#allocation3 + $0x60] sm:$0xff]  ;;  %v85_v29 = vld [vmem:[#allocation6 + $0x38] sm:$0xff]  ;;  %v75_v31 = vld [vmem:[#allocation3 + $0x68] sm:$0xff] }
  0x18   :  { %294 = vmatpush.xpose.msra.mxu3 %v108_v13  ;;  %v86_v27 = vld [vmem:[#allocation6 + $0x40] sm:$0xff]  ;;  %v101_v30 = vld [vmem:[#allocation6 + $0xb8] sm:$0xff]  ;;  %v84_v32 = vld [vmem:[#allocation6 + $0x30] sm:$0xff] }
  0x19   :  { %v102_v28 = vld [vmem:[#allocation6 + $0xc0] sm:$0xff]  ;;  %v100_v33 = vld [vmem:[#allocation6 + $0xb0] sm:$0xff]  ;;  %v83_v34 = vld [vmem:[#allocation6 + $0x28] sm:$0xff] }
  0x1a   :  { %144 = vmatpush.xpose.msra.mxu0 %v91_v14  ;;  %275 = vmatpush.xpose.msra.mxu2 %v91_v14  ;;  %v99_v35 = vld [vmem:[#allocation6 + $0xa8] sm:$0xff]  ;;  %v76_v36 = vld [vmem:[#allocation3 + $0x70] sm:$0xff]  ;;  %v82_v37 = vld [vmem:[#allocation6 + $0x20] sm:$0xff] }
  0x1b   :  { %209 = vmatpush.xpose.msra.mxu1 %v107_v15  ;;  %v98_v38 = vld [vmem:[#allocation6 + $0xa0] sm:$0xff]  ;;  %v81_v39 = vld [vmem:[#allocation6 + $0x18] sm:$0xff]  ;;  %v80_v42 = vld [vmem:[#allocation6 + $0x10] sm:$0xff] }
  0x1c   :  { %295 = vmatpush.xpose.msra.mxu3 %v107_v15  ;;  %v97_v40 = vld [vmem:[#allocation6 + $0x98] sm:$0xff]  ;;  %v96_v43 = vld [vmem:[#allocation6 + $0x90] sm:$0xff]  ;;  %v79_v44 = vld [vmem:[#allocation6 + $0x8] sm:$0xff] }
  0x1d   :  { %v77_v41 = vld [vmem:[#allocation3 + $0x78] sm:$0xff]  ;;  %v95_v45 = vld [vmem:[#allocation6 + $0x88] sm:$0xff]  ;;  %v78_v46 = vld [vmem:[#allocation6] sm:$0xff] }
  0x1e   :  { %145 = vmatpush.xpose.msra.mxu0 %v90_v17  ;;  %276 = vmatpush.xpose.msra.mxu2 %v90_v17  ;;  %v94_v47 = vld [vmem:[#allocation6 + $0x80] sm:$0xff] }
  0x1f   :  { %112 = vxpose.xlu0.b32.cont [3/16] %v64_v2, 128  ;;  %210 = vmatpush.xpose.msra.mxu1 %v106_v18 }
  0x20   :  { %296 = vmatpush.xpose.msra.mxu3 %v106_v18 }
  0x22   :  { %146 = vmatpush.xpose.msra.mxu0 %v89_v19  ;;  %277 = vmatpush.xpose.msra.mxu2 %v89_v19 }
  0x23   :  { %211 = vmatpush.xpose.msra.mxu1 %v105_v20 }
  0x24   :  { %297 = vmatpush.xpose.msra.mxu3 %v105_v20 }
  0x26   :  { %147 = vmatpush.xpose.msra.mxu0 %v88_v22  ;;  %278 = vmatpush.xpose.msra.mxu2 %v88_v22 }
  0x27   :  { %113 = vxpose.xlu0.b32.cont [4/16] %v65_v3, 128  ;;  %212 = vmatpush.xpose.msra.mxu1 %v104_v23 }
  0x28   :  { %298 = vmatpush.xpose.msra.mxu3 %v104_v23 }
  0x2a   :  { %148 = vmatpush.xpose.msra.mxu0 %v87_v24  ;;  %279 = vmatpush.xpose.msra.mxu2 %v87_v24 }
  0x2b   :  { %213 = vmatpush.xpose.msra.mxu1 %v103_v25 }
  0x2c   :  { %299 = vmatpush.xpose.msra.mxu3 %v103_v25 }
  0x2e   :  { %149 = vmatpush.xpose.msra.mxu0 %v86_v27  ;;  %280 = vmatpush.xpose.msra.mxu2 %v86_v27 }
  0x2f   :  { %114 = vxpose.xlu0.b32.cont [5/16] %v66_v4, 128  ;;  %214 = vmatpush.xpose.msra.mxu1 %v102_v28 }
  0x30   :  { %300 = vmatpush.xpose.msra.mxu3 %v102_v28 }
  0x32   :  { %150 = vmatpush.xpose.msra.mxu0 %v85_v29  ;;  %281 = vmatpush.xpose.msra.mxu2 %v85_v29 }
  0x33   :  { %215 = vmatpush.xpose.msra.mxu1 %v101_v30 }
  0x34   :  { %301 = vmatpush.xpose.msra.mxu3 %v101_v30 }
  0x36   :  { %151 = vmatpush.xpose.msra.mxu0 %v84_v32  ;;  %282 = vmatpush.xpose.msra.mxu2 %v84_v32 }
  0x37   :  { %115 = vxpose.xlu0.b32.cont [6/16] %v67_v5, 128  ;;  %216 = vmatpush.xpose.msra.mxu1 %v100_v33 }
  0x38   :  { %302 = vmatpush.xpose.msra.mxu3 %v100_v33 }
  0x3a   :  { %152 = vmatpush.xpose.msra.mxu0 %v83_v34  ;;  %283 = vmatpush.xpose.msra.mxu2 %v83_v34 }
  0x3b   :  { %217 = vmatpush.xpose.msra.mxu1 %v99_v35 }
  0x3c   :  { %303 = vmatpush.xpose.msra.mxu3 %v99_v35 }
  0x3e   :  { %153 = vmatpush.xpose.msra.mxu0 %v82_v37  ;;  %284 = vmatpush.xpose.msra.mxu2 %v82_v37 }
  0x3f   :  { %116 = vxpose.xlu0.b32.cont [7/16] %v68_v6, 128  ;;  %218 = vmatpush.xpose.msra.mxu1 %v98_v38 }
  0x40   :  { %304 = vmatpush.xpose.msra.mxu3 %v98_v38 }
  0x42   :  { %154 = vmatpush.xpose.msra.mxu0 %v81_v39  ;;  %285 = vmatpush.xpose.msra.mxu2 %v81_v39 }
  0x43   :  { %219 = vmatpush.xpose.msra.mxu1 %v97_v40 }
  0x44   :  { %305 = vmatpush.xpose.msra.mxu3 %v97_v40 }
  0x46   :  { %155 = vmatpush.xpose.msra.mxu0 %v80_v42  ;;  %286 = vmatpush.xpose.msra.mxu2 %v80_v42 }
  0x47   :  { %117 = vxpose.xlu0.b32.cont [8/16] %v69_v7, 128  ;;  %220 = vmatpush.xpose.msra.mxu1 %v96_v43 }
  0x48   :  { %306 = vmatpush.xpose.msra.mxu3 %v96_v43 }
  0x4a   :  { %156 = vmatpush.xpose.msra.mxu0 %v79_v44  ;;  %287 = vmatpush.xpose.msra.mxu2 %v79_v44 }
  0x4b   :  { %221 = vmatpush.xpose.msra.mxu1 %v95_v45 }
  0x4c   :  { %307 = vmatpush.xpose.msra.mxu3 %v95_v45 }
  0x4e   :  { %157 = vmatpush.xpose.msra.mxu0 %v78_v46  ;;  %288 = vmatpush.xpose.msra.mxu2 %v78_v46 }
  0x4f   :  { %118 = vxpose.xlu0.b32.cont [9/16] %v70_v8, 128  ;;  %222 = vmatpush.xpose.msra.mxu1 %v94_v47 }
  0x50   :  { %308 = vmatpush.xpose.msra.mxu3 %v94_v47 }
  0x57   :  { %119 = vxpose.xlu0.b32.cont [10/16] %v71_v11, 128 }
  0x5f   :  { %120 = vxpose.xlu0.b32.cont [11/16] %v72_v16, 128 }
  0x67   :  { %121 = vxpose.xlu0.b32.cont [12/16] %v73_v21, 128 }
  0x6f   :  { %122 = vxpose.xlu0.b32.cont [13/16] %v74_v26, 128 }
  0x77   :  { %123 = vxpose.xlu0.b32.cont [14/16] %v75_v31, 128 }
  0x7f   :  { %124 = vxpose.xlu0.b32.cont [15/16] %v76_v36, 128 }
  0x87   :  { %125 = vxpose.xlu0.b32.end [16/16] %v77_v41, 128 }
  0xb3   :  { %v126_v48 = vpop.trf.xlu0 }
  0xb4   :  { %158 = vmatmul.f32.vlgmr.msra.gmra.mxu0 %v126_v48  ;;  %223 = vmatmul.f32.vlgmr.msra.gmra.mxu1 %v126_v48 }
  0xbb   :  { %v127_v49 = vpop.trf.xlu0 }
  0xbc   :  { %161 = vmatmul.f32.gmra.mxu0 %v127_v49  ;;  %226 = vmatmul.f32.gmra.mxu1 %v127_v49 }
  0xc3   :  { %v128_v50 = vpop.trf.xlu0 }
  0xc4   :  { %164 = vmatmul.f32.gmra.mxu0 %v128_v50  ;;  %229 = vmatmul.f32.gmra.mxu1 %v128_v50 }
  0xcb   :  { %v129_v51 = vpop.trf.xlu0 }
  0xcc   :  { %167 = vmatmul.f32.gmra.mxu0 %v129_v51  ;;  %232 = vmatmul.f32.gmra.mxu1 %v129_v51 }
  0xd3   :  { %v130_v52 = vpop.trf.xlu0 }
  0xd4   :  { %170 = vmatmul.f32.gmra.mxu0 %v130_v52  ;;  %235 = vmatmul.f32.gmra.mxu1 %v130_v52 }
  0xdb   :  { %v131_v53 = vpop.trf.xlu0 }
  0xdc   :  { %173 = vmatmul.f32.gmra.mxu0 %v131_v53  ;;  %238 = vmatmul.f32.gmra.mxu1 %v131_v53 }
  0xe3   :  { %v132_v54 = vpop.trf.xlu0 }
  0xe4   :  { %176 = vmatmul.f32.gmra.mxu0 %v132_v54  ;;  %241 = vmatmul.f32.gmra.mxu1 %v132_v54 }
  0xeb   :  { %v133_v55 = vpop.trf.xlu0 }
  0xec   :  { %179 = vmatmul.f32.gmra.mxu0 %v133_v55  ;;  %244 = vmatmul.f32.gmra.mxu1 %v133_v55 }
  0xf3   :  { %v134_v56 = vpop.trf.xlu0 }
  0xf4   :  { %182 = vmatmul.f32.gmra.mxu0 %v134_v56  ;;  %247 = vmatmul.f32.gmra.mxu1 %v134_v56 }
  0xfb   :  { %v135_v57 = vpop.trf.xlu0 }
  0xfc   :  { %185 = vmatmul.f32.gmra.mxu0 %v135_v57  ;;  %250 = vmatmul.f32.gmra.mxu1 %v135_v57 }
 0x103   :  { %v136_v58 = vpop.trf.xlu0 }
 0x104   :  { %188 = vmatmul.f32.gmra.mxu0 %v136_v58  ;;  %253 = vmatmul.f32.gmra.mxu1 %v136_v58 }
 0x10b   :  { %v137_v59 = vpop.trf.xlu0 }
 0x10c   :  { %191 = vmatmul.f32.gmra.mxu0 %v137_v59  ;;  %256 = vmatmul.f32.gmra.mxu1 %v137_v59 }
 0x113   :  { %v138_v60 = vpop.trf.xlu0 }
 0x114   :  { %194 = vmatmul.f32.gmra.mxu0 %v138_v60  ;;  %259 = vmatmul.f32.gmra.mxu1 %v138_v60 }
 0x11b   :  { %v139_v61 = vpop.trf.xlu0 }
 0x11c   :  { %197 = vmatmul.f32.gmra.mxu0 %v139_v61  ;;  %262 = vmatmul.f32.gmra.mxu1 %v139_v61 }
 0x123   :  { %v140_v62 = vpop.trf.xlu0 }
 0x124   :  { %200 = vmatmul.f32.gmra.mxu0 %v140_v62  ;;  %265 = vmatmul.f32.gmra.mxu1 %v140_v62 }
 0x12b   :  { %v141_v63 = vpop.trf.xlu0 }
 0x12c   :  { %203 = vmatmul.f32.gmra.mxu0 %v141_v63  ;;  %268 = vmatmul.f32.gmra.mxu1 %v141_v63 }
 0x131   :  { %v1233_v0 = vpop.f32.mrf.mxu0  ;;  %v1235_v1 = vpop.f32.mrf.mxu1 }
 0x132   :  { %v321_v28 = vand.u32 2147483647, %v1233_v0  ;;  %v322_v31 = vand.u32 2147483647, %v1235_v1 }
 0x139   :  { %v1237_v2 = vpop.f32.mrf.mxu0  ;;  %v1239_v3 = vpop.f32.mrf.mxu1 }
 0x13a   :  { %v323_v34 = vand.u32 2147483647, %v1237_v2  ;;  %v324_v37 = vand.u32 2147483647, %v1239_v3 }
 0x141   :  { %v1241_v4 = vpop.f32.mrf.mxu0  ;;  %v1243_v5 = vpop.f32.mrf.mxu1 }
 0x142   :  { %v325_v29 = vand.u32 2147483647, %v1241_v4  ;;  %v326_v30 = vand.u32 2147483647, %v1243_v5 }
 0x144   :  { %v353_v40 = vmax.f32 %v321_v28, %v325_v29  ;;  %v354_v41 = vmax.f32 %v322_v31, %v326_v30 }
 0x149   :  { %v1245_v6 = vpop.f32.mrf.mxu0  ;;  %v1247_v7 = vpop.f32.mrf.mxu1 }
 0x14a   :  { %v327_v32 = vand.u32 2147483647, %v1245_v6  ;;  %v328_v33 = vand.u32 2147483647, %v1247_v7 }
 0x14c   :  { %v355_v44 = vmax.f32 %v323_v34, %v327_v32  ;;  %v356_v45 = vmax.f32 %v324_v37, %v328_v33 }
 0x151   :  { %v1249_v8 = vpop.f32.mrf.mxu0  ;;  %v1251_v9 = vpop.f32.mrf.mxu1 }
 0x152   :  { %v329_v35 = vand.u32 2147483647, %v1249_v8  ;;  %v330_v36 = vand.u32 2147483647, %v1251_v9 }
 0x154   :  { %v357_v48 = vmax.f32 %v353_v40, %v329_v35  ;;  %v358_v49 = vmax.f32 %v354_v41, %v330_v36 }
 0x159   :  { %v1253_v10 = vpop.f32.mrf.mxu0  ;;  %v1255_v11 = vpop.f32.mrf.mxu1 }
 0x15a   :  { %v331_v38 = vand.u32 2147483647, %v1253_v10  ;;  %v332_v39 = vand.u32 2147483647, %v1255_v11 }
 0x15c   :  { %v359_v52 = vmax.f32 %v355_v44, %v331_v38  ;;  %v360_v53 = vmax.f32 %v356_v45, %v332_v39 }
 0x161   :  { %v1257_v12 = vpop.f32.mrf.mxu0  ;;  %v1259_v13 = vpop.f32.mrf.mxu1 }
 0x162   :  { %v333_v42 = vand.u32 2147483647, %v1257_v12  ;;  %v334_v43 = vand.u32 2147483647, %v1259_v13 }
 0x164   :  { %v361_v58 = vmax.f32 %v357_v48, %v333_v42  ;;  %v362_v59 = vmax.f32 %v358_v49, %v334_v43 }
 0x169   :  { %v1261_v14 = vpop.f32.mrf.mxu0  ;;  %v1263_v15 = vpop.f32.mrf.mxu1 }
 0x16a   :  { %v335_v46 = vand.u32 2147483647, %v1261_v14  ;;  %v336_v47 = vand.u32 2147483647, %v1263_v15 }
 0x16c   :  { %v363_v62 = vmax.f32 %v359_v52, %v335_v46  ;;  %v364_v63 = vmax.f32 %v360_v53, %v336_v47 }
 0x171   :  { %v1265_v16 = vpop.f32.mrf.mxu0  ;;  %v1267_v17 = vpop.f32.mrf.mxu1 }
 0x172   :  { %v337_v50 = vand.u32 2147483647, %v1265_v16  ;;  %v338_v51 = vand.u32 2147483647, %v1267_v17 }
 0x174   :  { %v365_v30 = vmax.f32 %v361_v58, %v337_v50  ;;  %v366_v31 = vmax.f32 %v362_v59, %v338_v51 }
 0x179   :  { %v1269_v18 = vpop.f32.mrf.mxu0  ;;  %v1271_v19 = vpop.f32.mrf.mxu1 }
 0x17a   :  { %v339_v54 = vand.u32 2147483647, %v1269_v18  ;;  %v340_v55 = vand.u32 2147483647, %v1271_v19 }
 0x17c   :  { %v367_v34 = vmax.f32 %v363_v62, %v339_v54  ;;  %v368_v35 = vmax.f32 %v364_v63, %v340_v55 }
 0x181   :  { %v1273_v20 = vpop.f32.mrf.mxu0  ;;  %v1275_v21 = vpop.f32.mrf.mxu1 }
 0x182   :  { %v341_v60 = vand.u32 2147483647, %v1273_v20  ;;  %v342_v61 = vand.u32 2147483647, %v1275_v21 }
 0x184   :  { %v369_v38 = vmax.f32 %v365_v30, %v341_v60  ;;  %v370_v39 = vmax.f32 %v366_v31, %v342_v61  ;;  %v272_v61 = vld [vmem:[%s2213_s2] sm:$0x1] }
 0x185   :  { %309 = vmatmul.f32.vlgmr.msra.gmra.mxu3 %v272_v61  ;;  %289 = vmatmul.f32.vlgmr.msra.gmra.mxu2 %v272_v61 }
 0x189   :  { %v1277_v22 = vpop.f32.mrf.mxu0  ;;  %v1279_v23 = vpop.f32.mrf.mxu1 }
 0x18a   :  { %v343_v28 = vand.u32 2147483647, %v1277_v22  ;;  %v344_v29 = vand.u32 2147483647, %v1279_v23 }
 0x18c   :  { %v371_v42 = vmax.f32 %v367_v34, %v343_v28  ;;  %v372_v43 = vmax.f32 %v368_v35, %v344_v29 }
 0x191   :  { %v1281_v24 = vpop.f32.mrf.mxu0  ;;  %v1283_v25 = vpop.f32.mrf.mxu1 }
 0x192   :  { %v345_v32 = vand.u32 2147483647, %v1281_v24  ;;  %v346_v33 = vand.u32 2147483647, %v1283_v25 }
 0x194   :  { %v373_v44 = vmax.f32 %v369_v38, %v345_v32  ;;  %v374_v45 = vmax.f32 %v370_v39, %v346_v33  ;;  %v1165_v33 = vmov 127.0  }
 0x195   :  { %977 = vrcp.f32 %v1165_v33 }
 0x199   :  { %v1285_v26 = vpop.f32.mrf.mxu0  ;;  %v1287_v27 = vpop.f32.mrf.mxu1 }
 0x19a   :  { %v347_v36 = vand.u32 2147483647, %v1285_v26  ;;  %v348_v37 = vand.u32 2147483647, %v1287_v27 }
 0x19b   :  { %v978_v34 = vpop.eup %977 }
 0x19c   :  { %v375_v46 = vmax.f32 %v371_v42, %v347_v36  ;;  %v376_v47 = vmax.f32 %v372_v43, %v348_v37  ;;  %v396_v35 = vmul.f32 127.0, %v978_v34  ;;  %vm400_vm0 = vweird.f32 %v978_v34 }
 0x19d   :  { %v403_v42 = vstv %s2211_s0 }
 0x19e   :  { %v397_v36 = vsub.f32 1.0, %v396_v35 }
 0x1a0   :  { %v398_v37 = vmul.f32 %v978_v34, %v397_v36 }
 0x1a1   :  { %v1309_v56 = vpop.f32.mrf.mxu0  ;;  %v1311_v57 = vpop.f32.mrf.mxu1 }
 0x1a2   :  { %v349_v40 = vand.u32 2147483647, %v1309_v56  ;;  %v350_v41 = vand.u32 2147483647, %v1311_v57  ;;  %v399_v38 = vadd.f32 %v978_v34, %v398_v37 }
 0x1a4   :  { %v377_v50 = vmax.f32 %v373_v44, %v349_v40  ;;  %v378_v51 = vmax.f32 %v374_v45, %v350_v41  ;;  %v401_v40 = vsel %vm400_vm0, %v978_v34, %v399_v38 }
 0x1a6   :  { %v381_v58 = vmax.f32 %v377_v50, %v378_v51 }
 0x1a9   :  { %v1323_v48 = vpop.f32.mrf.mxu0  ;;  %v1325_v49 = vpop.f32.mrf.mxu1 }
 0x1aa   :  { %v351_v52 = vand.u32 2147483647, %v1323_v48  ;;  %v352_v53 = vand.u32 2147483647, %v1325_v49 }
 0x1ac   :  { %v379_v54 = vmax.f32 %v375_v46, %v351_v52  ;;  %v380_v55 = vmax.f32 %v376_v47, %v352_v53 }
 0x1ae   :  { %v382_v59 = vmax.f32 %v379_v54, %v380_v55 }
 0x1b0   :  { %v383_v60 = vmax.f32 %v381_v58, %v382_v59 }
 0x1b2   :  { %384 = vmax.xlane.f32.xlu1 %v383_v60 }
 0x208   :  { %v310_v55 = vpop.f32.mrf.mxu3 }
 0x225   :  { %v385_v62 = vpop.xlane.xlu1 %384 }
 0x226   :  { %v386_v63 = vrot.slane %v385_v62, 4 }
 0x228   :  { %v387_v28 = vmax.f32 %v385_v62, %v386_v63  ;;  %v316_v62 = vrot.slane %v310_v55, 7  ;;  %v290_v63 = vpop.f32.mrf.mxu2 }
 0x22a   :  { %v388_v29 = vrot.slane %v387_v28, 2  ;;  %v318_v33 = vsel %vm317_vm5, %v290_v63, %v316_v62 }
 0x22c   :  { %v389_v30 = vmax.f32 %v387_v28, %v388_v29 }
 0x22e   :  { %v390_v31 = vrot.slane %v389_v30, 1 }
 0x230   :  { %v391_v32 = vmax.f32 %v389_v30, %v390_v31 }
 0x232   :  { %697 = vpush %v391_v32  ;;  %v313_v32 = vld [vmem:[%s2215_s4] sm:$0x3]  ;;  %s1168_s4 = smov [#allocation9]  }
 0x233   :  { %v1355_v36 = vadd.f32 %v318_v33, %v313_v32  ;;  %s1634_s13 = sshll.u32 %s1168_s4, 4  ;;  %s630_s13 = int_to_ptr.vmem [resolvable:$true] %s1634_s13 }
 0x263   :  { %s698_s21 = spop %697 }
 0x264   :  { %v393_v39 = vstv %s698_s21  ;;  %s615_s21 = sshll.u32 %s1170_s7, 4  ;;  %s616_s21 = int_to_ptr.vmem [resolvable:$true] %s615_s21 }
 0x265   :  { %v394_v41 = vmax.f32 %v393_v39, 1e-12 }
 0x267   :  { %v402_v43 = vmul.f32 %v401_v40, %v394_v41 }
 0x269   :  { %699 = vpush %v402_v43  ;;  %v404_v44 = vmul.f32 %v403_v42, %v402_v43 }
 0x26a   :  { %610 = vst.msk [vmem:[#allocation14] sm:$0x1] %vm608_vm1, %v402_v43 }
 0x26b   :  { %701 = vpush %v404_v44 }
 0x26c   :  { %609 = vst.msk [vmem:[#allocation12] sm:$0x1] %vm608_vm1, %v404_v44 }
 0x26d   :  { %656 = dma.vmem_to_hbm [thread:$0]  %s652_s24, 16, %s654_s27, [#allocation13]  }
 0x26e   :  { %667 = dma.vmem_to_hbm [thread:$0]  %s663_s11, 16, %s665_s30, [#allocation13]  }
 0x29a   :  { %s700_s28 = spop %699 }
 0x29b   :  { %v407_v45 = vstv %s700_s28 }
 0x29c   :  { %979 = vrcp.f32 %v407_v45  ;;  %s702_s12 = spop %701  ;;  %v419_v59 = vand.u32 2147483648, %v407_v45  ;;  %vm413_vm3 = vweird.f32 %v407_v45  ;;  %v417_v61 = vand.u32 2147483647, %v407_v45 }
 0x29d   :  { %v1341_v47 = vstv %s702_s12 }
 0x29e   :  { %981 = vrcp.f32 %v1341_v47  ;;  %v420_v29 = vor.u32 1.1754944e-38, %v419_v59  ;;  %v562_v31 = vand.u32 2147483648, %v1341_v47  ;;  %vm418_vm6 = vcmp.eq.f32.partialorder %v417_v61, 8.507059e+37 }
 0x29f   :  { %v560_v38 = vand.u32 2147483647, %v1341_v47  ;;  %vm556_vm8 = vweird.f32 %v1341_v47 }
 0x2a0   :  { %v1353_v35 = vor.u32 1.1754944e-38, %v562_v31 }
 0x2a1   :  { %vm1479_vm9 = vcmp.eq.f32.partialorder %v560_v38, 8.507059e+37 }
 0x2a2   :  { %v980_v46 = vpop.eup %979 }
 0x2a3   :  { %v409_v50 = vmul.f32 %v980_v46, %v407_v45  ;;  %vm414_vm2 = vweird.f32 %v980_v46 }
 0x2a4   :  { %v1344_v52 = vpop.eup %981  ;;  %vm415_vm4 = vmor %vm413_vm3, %vm414_vm2 }
 0x2a5   :  { %v410_v51 = vsub.f32 1.0, %v409_v50  ;;  %v552_v54 = vmul.f32 %v1344_v52, %v1341_v47  ;;  %vm557_vm7 = vweird.f32 %v1344_v52 }
 0x2a6   :  { %vm1507_vm10 = vmor %vm556_vm8, %vm557_vm7 }
 0x2a7   :  { %v411_v53 = vmul.f32 %v980_v46, %v410_v51  ;;  %v553_v60 = vsub.f32 1.0, %v552_v54 }
 0x2a9   :  { %v412_v58 = vadd.f32 %v980_v46, %v411_v53  ;;  %v554_v30 = vmul.f32 %v1344_v52, %v553_v60 }
 0x2ab   :  { %v416_v28 = vsel %vm415_vm4, %v980_v46, %v412_v58  ;;  %v1358_v37 = vadd.f32 %v1344_v52, %v554_v30 }
 0x2ac   :  { %v421_v34 = vsel %vm418_vm6, %v420_v29, %v416_v28 }
 0x2ad   :  { %v1362_v39 = vmul.f32 %v421_v34, %v1233_v0  ;;  %v1365_v40 = vmul.f32 %v421_v34, %v1235_v1  ;;  %v1368_v41 = vmul.f32 %v421_v34, %v1237_v2  ;;  %v1371_v42 = vmul.f32 %v421_v34, %v1239_v3 }
 0x2ae   :  { %v1374_v43 = vmul.f32 %v421_v34, %v1241_v4  ;;  %v1377_v44 = vmul.f32 %v421_v34, %v1243_v5  ;;  %v1380_v45 = vmul.f32 %v421_v34, %v1245_v6  ;;  %v1383_v0 = vmul.f32 %v421_v34, %v1247_v7 }
 0x2af   :  { %v1386_v1 = vmul.f32 %v421_v34, %v1249_v8  ;;  %v1389_v2 = vmul.f32 %v421_v34, %v1251_v9  ;;  %v1392_v3 = vmul.f32 %v421_v34, %v1253_v10  ;;  %v1395_v4 = vmul.f32 %v421_v34, %v1255_v11 }
 0x2b0   :  { %v1398_v5 = vmul.f32 %v421_v34, %v1257_v12  ;;  %v1401_v6 = vmul.f32 %v421_v34, %v1259_v13  ;;  %v1404_v7 = vmul.f32 %v421_v34, %v1261_v14  ;;  %v1407_v8 = vmul.f32 %v421_v34, %v1263_v15 }
 0x2b1   :  { %v1410_v9 = vmul.f32 %v421_v34, %v1265_v16  ;;  %v1413_v10 = vmul.f32 %v421_v34, %v1267_v17  ;;  %v1416_v11 = vmul.f32 %v421_v34, %v1269_v18  ;;  %v1419_v12 = vmul.f32 %v421_v34, %v1271_v19 }
 0x2b2   :  { %v1422_v13 = vmul.f32 %v421_v34, %v1273_v20  ;;  %v1425_v14 = vmul.f32 %v421_v34, %v1275_v21  ;;  %v1428_v15 = vmul.f32 %v421_v34, %v1277_v22  ;;  %v1431_v16 = vmul.f32 %v421_v34, %v1279_v23 }
 0x2b3   :  { %v1434_v17 = vmul.f32 %v421_v34, %v1281_v24  ;;  %v1437_v18 = vmul.f32 %v421_v34, %v1283_v25  ;;  %v1440_v19 = vmul.f32 %v421_v34, %v1285_v26  ;;  %v1443_v20 = vmul.f32 %v421_v34, %v1287_v27 }
 0x2b4   :  { %v1447_v21 = vmul.f32 %v421_v34, %v1309_v56  ;;  %v1450_v22 = vmul.f32 %v421_v34, %v1311_v57  ;;  %v1453_v23 = vmul.f32 %v421_v34, %v1323_v48  ;;  %v1456_v24 = vmul.f32 %v421_v34, %v1325_v49 }
 0x2b5   :  { %v454_v25 = vmax.f32 %v1362_v39, -128.0  ;;  %v455_v26 = vmax.f32 %v1365_v40, -128.0  ;;  %v456_v27 = vmax.f32 %v1368_v41, -128.0  ;;  %v457_v56 = vmax.f32 %v1371_v42, -128.0 }
 0x2b6   :  { %v458_v46 = vmax.f32 %v1374_v43, -128.0  ;;  %v459_v57 = vmax.f32 %v1377_v44, -128.0  ;;  %v460_v48 = vmax.f32 %v1380_v45, -128.0  ;;  %v461_v50 = vmax.f32 %v1383_v0, -128.0 }
 0x2b7   :  { %v462_v49 = vmax.f32 %v1386_v1, -128.0  ;;  %v463_v51 = vmax.f32 %v1389_v2, -128.0  ;;  %v464_v53 = vmax.f32 %v1392_v3, -128.0  ;;  %v465_v54 = vmax.f32 %v1395_v4, -128.0 }
 0x2b8   :  { %v466_v55 = vmax.f32 %v1398_v5, -128.0  ;;  %v467_v58 = vmax.f32 %v1401_v6, -128.0  ;;  %v468_v59 = vmax.f32 %v1404_v7, -128.0  ;;  %v469_v60 = vmax.f32 %v1407_v8, -128.0 }
 0x2b9   :  { %v470_v61 = vmax.f32 %v1410_v9, -128.0  ;;  %v471_v62 = vmax.f32 %v1413_v10, -128.0  ;;  %v472_v63 = vmax.f32 %v1416_v11, -128.0  ;;  %v473_v28 = vmax.f32 %v1419_v12, -128.0 }
 0x2ba   :  { %v474_v30 = vmax.f32 %v1422_v13, -128.0  ;;  %v475_v31 = vmax.f32 %v1425_v14, -128.0  ;;  %v476_v32 = vmax.f32 %v1428_v15, -128.0  ;;  %v477_v33 = vmax.f32 %v1431_v16, -128.0 }
 0x2bb   :  { %v478_v34 = vmax.f32 %v1434_v17, -128.0  ;;  %v479_v39 = vmax.f32 %v1437_v18, -128.0  ;;  %v480_v40 = vmax.f32 %v1440_v19, -128.0  ;;  %v481_v41 = vmax.f32 %v1443_v20, -128.0 }
 0x2bc   :  { %v482_v38 = vmax.f32 %v1447_v21, -128.0  ;;  %v483_v42 = vmax.f32 %v1450_v22, -128.0  ;;  %v484_v43 = vmax.f32 %v1453_v23, -128.0  ;;  %v485_v44 = vmax.f32 %v1456_v24, -128.0 }
 0x2bd   :  { %v1495_v45 = vmin.f32 %v454_v25, 127.0  ;;  %v1497_v0 = vmin.f32 %v455_v26, 127.0  ;;  %v1499_v1 = vmin.f32 %v456_v27, 127.0  ;;  %v1501_v2 = vmin.f32 %v457_v56, 127.0 }
 0x2be   :  { %v1511_v4 = vmin.f32 %v458_v46, 127.0  ;;  %v1513_v5 = vmin.f32 %v459_v57, 127.0  ;;  %v1515_v6 = vmin.f32 %v460_v48, 127.0  ;;  %v1517_v7 = vmin.f32 %v461_v50, 127.0 }
 0x2bf   :  { %2269 = vst [vmem:[#allocation20_spill] sm:$0xff] %v1495_v45  ;;  %v1519_v8 = vmin.f32 %v462_v49, 127.0  ;;  %v1521_v9 = vmin.f32 %v463_v51, 127.0  ;;  %v1523_v10 = vmin.f32 %v464_v53, 127.0  ;;  %v559_v11 = vsel %vm1507_vm10, %v1344_v52, %v1358_v37 }
 0x2c0   :  { %v1529_v12 = vmin.f32 %v465_v54, 127.0  ;;  %v1531_v13 = vmin.f32 %v466_v55, 127.0  ;;  %v1533_v14 = vmin.f32 %v467_v58, 127.0  ;;  %v1535_v15 = vmin.f32 %v468_v59, 127.0 }
 0x2c1   :  { %v1537_v16 = vmin.f32 %v469_v60, 127.0  ;;  %v1539_v17 = vmin.f32 %v470_v61, 127.0  ;;  %v1541_v18 = vmin.f32 %v471_v62, 127.0  ;;  %v1543_v19 = vmin.f32 %v472_v63, 127.0 }
 0x2c2   :  { %v1545_v20 = vmin.f32 %v473_v28, 127.0  ;;  %v1547_v21 = vmin.f32 %v474_v30, 127.0  ;;  %v1549_v52 = vmin.f32 %v475_v31, 127.0  ;;  %v564_v37 = vsel %vm1479_vm9, %v1353_v35, %v559_v11 }
 0x2c3   :  { %2272 = vst [vmem:[#allocation21_spill] sm:$0xff] %v1541_v18  ;;  %v1554_v22 = vmin.f32 %v476_v32, 127.0  ;;  %v1556_v23 = vmin.f32 %v477_v33, 127.0  ;;  %v1558_v24 = vmin.f32 %v478_v34, 127.0  ;;  %v1560_v25 = vmin.f32 %v479_v39, 127.0 }
 0x2c4   :  { %2273 = vst [vmem:[#allocation22_spill] sm:$0xff] %v1543_v19  ;;  %v1562_v26 = vmin.f32 %v480_v40, 127.0  ;;  %v1564_v27 = vmin.f32 %v481_v41, 127.0  ;;  %v1566_v56 = vmin.f32 %v482_v38, 127.0  ;;  %v1568_v46 = vmin.f32 %v483_v42, 127.0 }
 0x2c5   :  { %2274 = vst [vmem:[#allocation23_spill] sm:$0xff] %v1545_v20  ;;  %v1570_v57 = vmin.f32 %v484_v43, 127.0  ;;  %v1572_v48 = vmin.f32 %v485_v44, 127.0  ;;  %v565_v35 = vmul.f32 %v564_v37, %v1355_v36  ;;  %v705_v49 = vcvt.f32.s32 %v1495_v45 }
 0x2c6   :  { %2275 = vst [vmem:[#allocation24_spill] sm:$0xff] %v1547_v21  ;;  %v713_v54 = vcvt.f32.s32 %v1497_v0  ;;  %v721_v59 = vcvt.f32.s32 %v1499_v1  ;;  %v729_v61 = vcvt.f32.s32 %v1501_v2  ;;  %v737_v29 = vcvt.f32.s32 %v1511_v4 }
 0x2c7   :  { %2276 = vst [vmem:[#allocation25_spill] sm:$0xff] %v1549_v52  ;;  %v1588_v28 = vclamps-f32 %v565_v35, 2.1474836e+09  ;;  %v745_v32 = vcvt.f32.s32 %v1513_v5  ;;  %v753_v39 = vcvt.f32.s32 %v1515_v6  ;;  %v761_v38 = vcvt.f32.s32 %v1517_v7 }
 0x2c8   :  { %2277 = vst [vmem:[#allocation26_spill] sm:$0xff] %v1554_v22  ;;  %v769_v44 = vcvt.f32.s32 %v1519_v8  ;;  %v777_v37 = vcvt.f32.s32 %v1521_v9  ;;  %v785_v33 = vcvt.f32.s32 %v1523_v10  ;;  %v793_v62 = vcvt.f32.s32 %v1529_v12 }
 0x2c9   :  { %2278 = vst [vmem:[#allocation27_spill] sm:$0xff] %v1556_v23  ;;  %v801_v11 = vcvt.f32.s32 %v1531_v13  ;;  %v809_v40 = vcvt.f32.s32 %v1533_v14  ;;  %v961_v42 = vcvt.f32.s32 %v1588_v28  ;;  %v601_v55 = vlaneseq }
 0x2ca   :  { %2279 = vst [vmem:[#allocation28_spill] sm:$0xff] %v1558_v24  ;;  %v959_v36 = vand.u32 2147483647, %v1588_v28  ;;  %v964_v53 = vand.u32 2147483648, %v1588_v28  ;;  %v881_v30 = vcvt.f32.s32 %v1554_v22  ;;  %v905_v51 = vcvt.f32.s32 %v1560_v25  ;;  %v2363_v22 = vld [vmem:[#allocation21_spill] sm:$0xff] }
 0x2cb   :  { %2280 = vst [vmem:[#allocation29_spill] sm:$0xff] %v1560_v25  ;;  %v962_v63 = vcvt.s32.f32 %v961_v42  ;;  %vm1645_vm11 = vcmp.lt.s32.totalorder %v601_v55, 256  ;;  %v873_v55 = vcvt.f32.s32 %v1549_v52  ;;  %v921_v41 = vcvt.f32.s32 %v1564_v27 }
 0x2cc   :  { %2281 = vst [vmem:[#allocation30_spill] sm:$0xff] %v1562_v26  ;;  %vm960_vm12 = vcmp.lt.f32.partialorder %v959_v36, 8388608.0  ;;  %v929_v43 = vcvt.f32.s32 %v1566_v56  ;;  %v953_v50 = vcvt.f32.s32 %v1572_v48  ;;  %v722_v34 = vcvt.s32.f32 %v721_v59 }
 0x2cd   :  { %2282 = vst [vmem:[#allocation31_spill] sm:$0xff] %v1564_v27  ;;  %v963_v58 = vand.u32 2147483647, %v962_v63  ;;  %v730_v42 = vcvt.s32.f32 %v729_v61  ;;  %v1708_v60 = vcvt.s32.f32 %v737_v29  ;;  %v1712_v63 = vcvt.s32.f32 %v745_v32 }
 0x2ce   :  { %2283 = vst [vmem:[#allocation32_spill] sm:$0xff] %v1566_v56  ;;  %v1724_v59 = vcvt.s32.f32 %v769_v44  ;;  %v1728_v61 = vcvt.s32.f32 %v777_v37  ;;  %v1732_v29 = vcvt.s32.f32 %v785_v33  ;;  %v1736_v32 = vcvt.s32.f32 %v793_v62 }
 0x2cf   :  { %2284 = vst [vmem:[#allocation33_spill] sm:$0xff] %v1568_v46  ;;  %v965_v35 = vor.u32 %v964_v53, %v963_v58  ;;  %v889_v53 = vcvt.f32.s32 %v1556_v23  ;;  %v913_v58 = vcvt.f32.s32 %v1562_v26  ;;  %v2289_v44 = vcvt.f32.s32 %v1535_v15 }
 0x2d0   :  { %2285 = vst [vmem:[#allocation34_spill] sm:$0xff] %v1570_v57  ;;  %v2290_v31 = vcvt.f32.s32 %v1537_v16  ;;  %v1800_v52 = vcvt.s32.f32 %v905_v51  ;;  %v1818_v51 = vcvt.s32.f32 %v953_v50  ;;  %v787_v50 = vand.u32 2147483647, %v1732_v29 }
 0x2d1   :  { %2286 = vst [vmem:[#allocation35_spill] sm:$0xff] %v1572_v48  ;;  %v966_v3 = vsel %vm960_vm12, %v965_v35, %v1588_v28  ;;  %v897_v35 = vcvt.f32.s32 %v1558_v24  ;;  %v945_v28 = vcvt.f32.s32 %v1570_v57  ;;  %v1748_v37 = vcvt.s32.f32 %v2289_v44 }
 0x2d2   :  { %605 = vst.msk [vmem:[#allocation9] sm:$0x3] %vm1645_vm11, %v966_v3  ;;  %v606_v36 = vmul.f32 %v966_v3, %v1341_v47  ;;  %v937_v3 = vcvt.f32.s32 %v1568_v46  ;;  %v714_v47 = vcvt.s32.f32 %v713_v54  ;;  %v1720_v54 = vcvt.s32.f32 %v761_v38 }
 0x2d3   :  { %634 = dma.vmem_to_hbm [thread:$0]  %s630_s13, 32, %s632_s16, [#allocation10]   ;;  %v1744_v38 = vcvt.s32.f32 %v809_v40  ;;  %v1752_v33 = vcvt.s32.f32 %v2290_v31  ;;  %v2291_v48 = vcvt.f32.s32 %v1539_v17  ;;  %v2292_v57 = vand.u32 2147483647, %v1495_v45  ;;  %2308 = vst [vmem:[#allocation39_spill] sm:$0xff] %v1800_v52 }
 0x2d4   :  { %607 = vst.msk [vmem:[#allocation11] sm:$0x3] %vm1645_vm11, %v606_v36  ;;  %v706_v36 = vcvt.s32.f32 %v705_v49  ;;  %v1716_v49 = vcvt.s32.f32 %v753_v39  ;;  %v1740_v39 = vcvt.s32.f32 %v801_v11  ;;  %v2295_v40 = vcvt.f32.s32 %v1541_v18 }
 0x2d5   :  { %645 = dma.vmem_to_hbm [thread:$0]  %s641_s6, 32, %s643_s3, [#allocation10]   ;;  %v1756_v62 = vcvt.s32.f32 %v2291_v48  ;;  %vm1760_vm13 = vcmp.lt.f32.partialorder %v2292_v57, 8388608.0  ;;  %v2296_v44 = vcvt.f32.s32 %v1543_v19  ;;  %v2297_v31 = vcvt.f32.s32 %v1545_v20 }
 0x2d6   :  { %v1766_v46 = vcvt.s32.f32 %v2295_v40  ;;  %v2298_v48 = vcvt.f32.s32 %v1547_v21  ;;  %v2299_v57 = vand.u32 2147483647, %v1497_v0  ;;  %v1786_v40 = vcvt.s32.f32 %v873_v55 }
 0x2d7   :  { %v1770_v56 = vcvt.s32.f32 %v2296_v44  ;;  %v1774_v27 = vcvt.s32.f32 %v2297_v31  ;;  %v1788_v24 = vcvt.s32.f32 %v881_v30  ;;  %v1790_v44 = vcvt.s32.f32 %v889_v53 }
 0x2d8   :  { %v1778_v26 = vcvt.s32.f32 %v2298_v48  ;;  %vm1782_vm14 = vcmp.lt.f32.partialorder %v2299_v57, 8388608.0  ;;  %v707_v23 = vand.u32 2147483647, %v706_v36  ;;  %v2304_v31 = vand.u32 2147483647, %v1499_v1 }
 0x2d9   :  { %2302 = vst [vmem:[#allocation36_spill] sm:$0xff] %v1788_v24  ;;  %v1798_v48 = vcvt.s32.f32 %v897_v35  ;;  %v1802_v57 = vcvt.s32.f32 %v913_v58  ;;  %v715_v21 = vand.u32 2147483647, %v714_v47  ;;  %v2310_v55 = vand.u32 2147483647, %v1501_v2 }
 0x2da   :  { %2303 = vst [vmem:[#allocation37_spill] sm:$0xff] %v1790_v44  ;;  %vm1794_vm15 = vcmp.lt.f32.partialorder %v2304_v31, 8388608.0  ;;  %v1810_v53 = vcvt.s32.f32 %v921_v41  ;;  %v1812_v36 = vcvt.s32.f32 %v929_v43  ;;  %v1814_v31 = vcvt.s32.f32 %v937_v3 }
 0x2db   :  { %2307 = vst [vmem:[#allocation38_spill] sm:$0xff] %v1798_v48  ;;  %vm1806_vm0 = vcmp.lt.f32.partialorder %v2310_v55, 8388608.0  ;;  %v723_v20 = vand.u32 2147483647, %v722_v34  ;;  %v1816_v35 = vcvt.s32.f32 %v945_v28  ;;  %v731_v58 = vand.u32 2147483647, %v730_v42 }
 0x2dc   :  { %2309 = vst [vmem:[#allocation40_spill] sm:$0xff] %v1802_v57  ;;  %v739_v47 = vand.u32 2147483647, %v1708_v60  ;;  %v747_v19 = vand.u32 2147483647, %v1712_v63  ;;  %v2314_v41 = vand.u32 2147483648, %v1495_v45 }
 0x2dd   :  { %2313 = vst [vmem:[#allocation41_spill] sm:$0xff] %v1810_v53  ;;  %v755_v55 = vand.u32 2147483647, %v1716_v49  ;;  %v763_v18 = vand.u32 2147483647, %v1720_v54  ;;  %v2316_v42 = vand.u32 2147483648, %v1497_v0 }
 0x2de   :  { %v1826_v43 = vor.u32 %v2314_v41, %v707_v23  ;;  %v771_v3 = vand.u32 2147483647, %v1724_v59  ;;  %v779_v34 = vand.u32 2147483647, %v1728_v61  ;;  %v2317_v60 = vand.u32 2147483647, %v1511_v4 }
 0x2df   :  { %v1833_v28 = vor.u32 %v2316_v42, %v715_v21  ;;  %v795_v49 = vand.u32 2147483647, %v1736_v32  ;;  %v803_v23 = vand.u32 2147483647, %v1740_v39  ;;  %v811_v54 = vand.u32 2147483647, %v1744_v38 }
 0x2e0   :  { %2315 = vst [vmem:[#allocation42_spill] sm:$0xff] %v1826_v43  ;;  %vm1837_vm1 = vcmp.lt.f32.partialorder %v2317_v60, 8388608.0  ;;  %v2320_v59 = vand.u32 2147483648, %v1499_v1  ;;  %v2321_v29 = vand.u32 2147483647, %v1513_v5  ;;  %v2325_v42 = vmov 0 }
 0x2e1   :  { %v2324_v41 = vand.u32 2147483647, %v1515_v6  ;;  %v2328_v32 = vand.u32 2147483647, %v1517_v7  ;;  %v2329_v39 = vmov 0  ;;  %v2333_v38 = vmov 0 }
 0x2e2   :  { %v1846_v61 = vor.u32 %v2320_v59, %v723_v20  ;;  %vm1850_vm2 = vcmp.lt.f32.partialorder %v2321_v29, 8388608.0  ;;  %v2332_v20 = vand.u32 2147483647, %v1519_v8  ;;  %v819_v60 = vand.u32 2147483647, %v1748_v37  ;;  %v2372_v53 = vld [vmem:[#allocation22_spill] sm:$0xff] }
 0x2e3   :  { %vm1856_vm3 = vcmp.lt.f32.partialorder %v2324_v41, 8388608.0  ;;  %vm1862_vm4 = vcmp.lt.f32.partialorder %v2328_v32, 8388608.0  ;;  %v827_v59 = vand.u32 2147483647, %v1752_v33  ;;  %v835_v29 = vand.u32 2147483647, %v1756_v62 }
 0x2e4   :  { %v2326_v42 = vsel %vm1856_vm3, 4294967295, %v2325_v42  ;;  %v2330_v39 = vsel %vm1862_vm4, 4294967295, %v2329_v39  ;;  %vm1868_vm5 = vcmp.lt.f32.partialorder %v2332_v20, 8388608.0  ;;  %v2336_v41 = vand.u32 2147483648, %v1501_v2 }
 0x2e5   :  { %2327 = vst [vmem:[#allocation43_spill] sm:$0xff] %v2326_v42  ;;  %v2334_v38 = vsel %vm1868_vm5, 4294967295, %v2333_v38  ;;  %v2337_v32 = vand.u32 2147483647, %v1521_v9  ;;  %v2340_v20 = vand.u32 2147483647, %v1523_v10 }
 0x2e6   :  { %2331 = vst [vmem:[#allocation44_spill] sm:$0xff] %v2330_v39  ;;  %v1877_v42 = vor.u32 %v2336_v41, %v731_v58  ;;  %v843_v37 = vand.u32 2147483647, %v1766_v46  ;;  %v851_v33 = vand.u32 2147483647, %v1770_v56  ;;  %v2368_v46 = vand.u32 2147483648, %v1513_v5 }
 0x2e7   :  { %2335 = vst [vmem:[#allocation45_spill] sm:$0xff] %v2334_v38  ;;  %vm1881_vm6 = vcmp.lt.f32.partialorder %v2337_v32, 8388608.0  ;;  %vm1887_vm7 = vcmp.lt.f32.partialorder %v2340_v20, 8388608.0  ;;  %v2341_v38 = vmov 0  ;;  %v859_v62 = vand.u32 2147483647, %v1774_v27 }
 0x2e8   :  { %v2342_v38 = vsel %vm1887_vm7, 4294967295, %v2341_v38  ;;  %v2344_v41 = vand.u32 2147483647, %v1529_v12  ;;  %v2347_v20 = vand.u32 2147483647, %v1531_v13  ;;  %v2374_v52 = vmov 0 }
 0x2e9   :  { %2343 = vst [vmem:[#allocation46_spill] sm:$0xff] %v2342_v38  ;;  %v867_v56 = vand.u32 2147483647, %v1778_v26  ;;  %v875_v27 = vand.u32 2147483647, %v1786_v40  ;;  %v2379_v24 = vmov 0 }
 0x2ea   :  { %vm1900_vm8 = vcmp.lt.f32.partialorder %v2344_v41, 8388608.0  ;;  %vm1906_vm9 = vcmp.lt.f32.partialorder %v2347_v20, 8388608.0  ;;  %v718_v41 = vsel %vm1782_vm14, %v1833_v28, %v1497_v0  ;;  %v2350_v58 = vand.u32 2147483647, %v1533_v14  ;;  %v2431_v32 = vld [vmem:[#allocation32_spill] sm:$0xff]  ;;  %v2436_v43 = vld [vmem:[#allocation42_spill] sm:$0xff] }
 0x2eb   :  { %v2353_v20 = vand.u32 2147483647, %v1535_v15  ;;  %v2356_v26 = vand.u32 2147483647, %v1537_v16  ;;  %v2359_v0 = vand.u32 2147483648, %v1511_v4  ;;  %v2361_v28 = vmov 0 }
 0x2ec   :  { %vm1919_vm10 = vcmp.lt.f32.partialorder %v2350_v58, 8388608.0  ;;  %v726_v58 = vsel %vm1794_vm15, %v1846_v61, %v1499_v1  ;;  %v2360_v25 = vand.u32 2147483647, %v1539_v17  ;;  %v2364_v1 = vand.u32 2147483647, %v2363_v22 }
 0x2ed   :  { %vm1925_vm11 = vcmp.lt.f32.partialorder %v2353_v20, 8388608.0  ;;  %vm1931_vm12 = vcmp.lt.f32.partialorder %v2356_v26, 8388608.0  ;;  %v734_v26 = vsel %vm1806_vm0, %v1877_v42, %v1501_v2  ;;  %v741_v44 = vor.u32 %v2359_v0, %v739_v47 }
 0x2ee   :  { %vm1952_vm14 = vcmp.lt.f32.partialorder %v2360_v25, 8388608.0  ;;  %vm1958_vm15 = vcmp.lt.f32.partialorder %v2364_v1, 8388608.0  ;;  %v2365_v61 = vmov 0  ;;  %v749_v20 = vor.u32 %v2368_v46, %v747_v19  ;;  %v2377_v1 = vld [vmem:[#allocation23_spill] sm:$0xff] }
 0x2ef   :  { %v2362_v28 = vsel %vm1952_vm14, 4294967295, %v2361_v28  ;;  %v2366_v61 = vsel %vm1958_vm15, 4294967295, %v2365_v61  ;;  %v2369_v2 = vand.u32 2147483648, %v1515_v6  ;;  %v2370_v47 = vand.u32 2147483648, %v1517_v7 }
 0x2f0   :  { %2367 = vst [vmem:[#allocation21_spill] sm:$0xff] %v2366_v61  ;;  %v2371_v0 = vand.u32 2147483648, %v1519_v8  ;;  %v2373_v57 = vand.u32 2147483647, %v2372_v53  ;;  %v2378_v48 = vand.u32 2147483647, %v2377_v1  ;;  %v750_v63 = vsel %vm1850_vm2, %v749_v20, %v1513_v5 }
 0x2f1   :  { %v757_v30 = vor.u32 %v2369_v2, %v755_v55  ;;  %v765_v42 = vor.u32 %v2370_v47, %v763_v18  ;;  %v931_v19 = vand.u32 2147483647, %v1812_v36  ;;  %v939_v55 = vand.u32 2147483647, %v1814_v31 }
 0x2f2   :  { %v773_v25 = vor.u32 %v2371_v0, %v771_v3  ;;  %vm1972_vm0 = vcmp.lt.f32.partialorder %v2373_v57, 8388608.0  ;;  %vm1978_vm15 = vcmp.lt.f32.partialorder %v2378_v48, 8388608.0  ;;  %v2382_v18 = vand.u32 2147483648, %v1521_v9  ;;  %v2384_v57 = vld [vmem:[#allocation24_spill] sm:$0xff] }
 0x2f3   :  { %v2375_v52 = vsel %vm1972_vm0, 4294967295, %v2374_v52  ;;  %v2380_v24 = vsel %vm1978_vm15, 4294967295, %v2379_v24  ;;  %v2383_v3 = vand.u32 2147483648, %v1523_v10  ;;  %v2385_v47 = vand.u32 2147483647, %v2384_v57 }
 0x2f4   :  { %2376 = vst [vmem:[#allocation22_spill] sm:$0xff] %v2375_v52  ;;  %v781_v46 = vor.u32 %v2382_v18, %v779_v34  ;;  %v2386_v0 = vmov 0  ;;  %v947_v48 = vand.u32 2147483647, %v1816_v35  ;;  %v2389_v36 = vand.u32 2147483648, %v1529_v12  ;;  %v2391_v34 = vld [vmem:[#allocation25_spill] sm:$0xff] }
 0x2f5   :  { %2381 = vst [vmem:[#allocation23_spill] sm:$0xff] %v2380_v24  ;;  %v789_v2 = vor.u32 %v2383_v3, %v787_v50  ;;  %vm1990_vm14 = vcmp.lt.f32.partialorder %v2385_v47, 8388608.0  ;;  %v955_v24 = vand.u32 2147483647, %v1818_v51  ;;  %v2390_v31 = vand.u32 2147483648, %v1531_v13 }
 0x2f6   :  { %v2387_v0 = vsel %vm1990_vm14, 4294967295, %v2386_v0  ;;  %v797_v52 = vor.u32 %v2389_v36, %v795_v49  ;;  %v2392_v18 = vand.u32 2147483647, %v2391_v34  ;;  %v742_v3 = vsel %vm1837_vm1, %v741_v44, %v1511_v4 }
 0x2f7   :  { %2388 = vst [vmem:[#allocation24_spill] sm:$0xff] %v2387_v0  ;;  %v805_v61 = vor.u32 %v2390_v31, %v803_v23  ;;  %v2395_v35 = vand.u32 2147483648, %v1533_v14  ;;  %v2396_v51 = vand.u32 2147483648, %v1535_v15  ;;  %v2397_v49 = vand.u32 2147483648, %v1537_v16  ;;  %v2398_v23 = vld [vmem:[#allocation26_spill] sm:$0xff] }
 0x2f8   :  { %vm2002_vm15 = vcmp.lt.f32.partialorder %v2392_v18, 8388608.0  ;;  %v2399_v31 = vand.u32 2147483647, %v2398_v23  ;;  %v758_v44 = vsel %vm1856_vm3, %v757_v30, %v1515_v6  ;;  %v782_v5 = vsel %vm1881_vm6, %v781_v46, %v1521_v9 }
 0x2f9   :  { %v813_v47 = vor.u32 %v2395_v35, %v811_v54  ;;  %v821_v0 = vor.u32 %v2396_v51, %v819_v60  ;;  %v829_v36 = vor.u32 %v2397_v49, %v827_v59  ;;  %v766_v60 = vsel %vm1862_vm4, %v765_v42, %v1517_v7  ;;  %v2405_v51 = vld [vmem:[#allocation27_spill] sm:$0xff]  ;;  %v2412_v42 = vld [vmem:[#allocation28_spill] sm:$0xff]  ;;  %v2416_v54 = vld [vmem:[#allocation29_spill] sm:$0xff] }
 0x2fa   :  { %vm2017_vm14 = vcmp.lt.f32.partialorder %v2399_v31, 8388608.0  ;;  %v774_v35 = vsel %vm1868_vm5, %v773_v25, %v1519_v8  ;;  %v2406_v49 = vand.u32 2147483647, %v2405_v51  ;;  %v790_v21 = vsel %vm1887_vm7, %v789_v2, %v1523_v10 }
 0x2fb   :  { %v2410_v7 = vand.u32 2147483648, %v1539_v17  ;;  %v2411_v30 = vand.u32 2147483648, %v2363_v22  ;;  %v2413_v25 = vand.u32 2147483647, %v2412_v42  ;;  %v2417_v59 = vand.u32 2147483647, %v2416_v54 }
 0x2fc   :  { %vm2035_vm1 = vcmp.lt.f32.partialorder %v2406_v49, 8388608.0  ;;  %v798_v10 = vsel %vm1900_vm8, %v797_v52, %v1529_v12  ;;  %v806_v39 = vsel %vm1906_vm9, %v805_v61, %v1531_v13  ;;  %v2421_v46 = vand.u32 2147483648, %v2377_v1  ;;  %v2422_v49 = vld [vmem:[#allocation30_spill] sm:$0xff] }
 0x2fd   :  { %v837_v20 = vor.u32 %v2410_v7, %v835_v29  ;;  %v845_v8 = vor.u32 %v2411_v30, %v843_v37  ;;  %vm2051_vm2 = vcmp.lt.f32.partialorder %v2413_v25, 8388608.0  ;;  %vm2057_vm3 = vcmp.lt.f32.partialorder %v2417_v59, 8388608.0  ;;  %v2426_v30 = vld [vmem:[#allocation31_spill] sm:$0xff] }
 0x2fe   :  { %v2420_v29 = vand.u32 2147483648, %v2372_v53  ;;  %v861_v2 = vor.u32 %v2421_v46, %v859_v62  ;;  %v2423_v6 = vand.u32 2147483647, %v2422_v49  ;;  %v2427_v25 = vand.u32 2147483647, %v2426_v30  ;;  %v2442_v46 = vld [vmem:[#allocation36_spill] sm:$0xff] }
 0x2ff   :  { %v814_v13 = vsel %vm1919_vm10, %v813_v47, %v1533_v14  ;;  %v822_v52 = vsel %vm1925_vm11, %v821_v0, %v1535_v15  ;;  %v830_v38 = vsel %vm1931_vm12, %v829_v36, %v1537_v16  ;;  %v2432_v61 = vand.u32 2147483647, %v2431_v32  ;;  %v2437_v15 = vld [vmem:[#allocation20_spill] sm:$0xff]  ;;  %v2440_v36 = vld [vmem:[#allocation21_spill] sm:$0xff] }
 0x300   :  { %v853_v37 = vor.u32 %v2420_v29, %v851_v33  ;;  %vm2073_vm4 = vcmp.lt.f32.partialorder %v2423_v6, 8388608.0  ;;  %vm2079_vm5 = vcmp.lt.f32.partialorder %v2427_v25, 8388608.0  ;;  %v2430_v33 = vand.u32 2147483648, %v2384_v57 }
 0x301   :  { %vm2096_vm6 = vcmp.lt.f32.partialorder %v2432_v61, 8388608.0  ;;  %v2435_v45 = vand.u32 2147483648, %v2391_v34  ;;  %v2438_v0 = vsel %vm1760_vm13, %v2436_v43, %v2437_v15  ;;  %v570_v40 = vpack.c.bf16 %v734_v26, %v726_v58  ;;  %v2446_v58 = vld [vmem:[#allocation23_spill] sm:$0xff] }
 0x302   :  { %v869_v62 = vor.u32 %v2430_v33, %v867_v56  ;;  %v569_v47 = vpack.c.bf16 %v718_v41, %v2438_v0  ;;  %v571_v16 = vpack.c.bf16 %v750_v63, %v742_v3  ;;  %vm2439_vm7 = vnez %v2362_v28  ;;  %v2448_v28 = vld [vmem:[#allocation37_spill] sm:$0xff] }
 0x303   :  { %v877_v14 = vor.u32 %v2435_v45, %v875_v27  ;;  %v838_v56 = vsel %vm2439_vm7, %v837_v20, %v1539_v17  ;;  %vm2441_vm8 = vnez %v2440_v36  ;;  %v2443_v6 = vand.u32 2147483647, %v2442_v46  ;;  %v2451_v20 = vld [vmem:[#allocation24_spill] sm:$0xff]  ;;  %586 = vst [vmem:[#allocation8 + $0x8] sm:$0xff] %v570_v40  ;;  %v2462_v0 = vld [vmem:[#allocation41_spill] sm:$0xff] }
 0x304   :  { %v846_v29 = vsel %vm2441_vm8, %v845_v8, %v2363_v22  ;;  %v2444_v27 = vand.u32 2147483648, %v2398_v23  ;;  %v572_v11 = vpack.c.bf16 %v766_v60, %v758_v44  ;;  %v854_v41 = vsel %vm1972_vm0, %v853_v37, %v2372_v53  ;;  %585 = vst [vmem:[#allocation8] sm:$0xff] %v569_v47  ;;  %v2453_v44 = vld [vmem:[#allocation38_spill] sm:$0xff]  ;;  %v2456_v37 = vld [vmem:[#allocation39_spill] sm:$0xff] }
 0x305   :  { %vm2447_vm13 = vnez %v2446_v58  ;;  %v2449_v17 = vand.u32 2147483647, %v2448_v28  ;;  %v2450_v3 = vand.u32 2147483648, %v2405_v51  ;;  %v573_v22 = vpack.c.bf16 %v782_v5, %v774_v35  ;;  %v2459_v5 = vld [vmem:[#allocation40_spill] sm:$0xff]  ;;  %587 = vst [vmem:[#allocation8 + $0x10] sm:$0xff] %v571_v16  ;;  %v2468_v58 = vld [vmem:[#allocation34_spill] sm:$0xff] }
 0x306   :  { %v885_v25 = vor.u32 %v2444_v27, %v2443_v6  ;;  %v862_v26 = vsel %vm2447_vm13, %v861_v2, %v2377_v1  ;;  %vm2452_vm9 = vnez %v2451_v20  ;;  %v2454_v60 = vand.u32 2147483647, %v2453_v44  ;;  %588 = vst [vmem:[#allocation8 + $0x18] sm:$0xff] %v572_v11 }
 0x307   :  { %v893_v63 = vor.u32 %v2450_v3, %v2449_v17  ;;  %v870_v8 = vsel %vm2452_vm9, %v869_v62, %v2384_v57  ;;  %v2455_v61 = vand.u32 2147483648, %v2412_v42  ;;  %v2457_v45 = vand.u32 2147483647, %v2456_v37  ;;  %589 = vst [vmem:[#allocation8 + $0x20] sm:$0xff] %v573_v22 }
 0x308   :  { %v2458_v1 = vand.u32 2147483648, %v2416_v54  ;;  %v574_v43 = vpack.c.bf16 %v798_v10, %v790_v21  ;;  %v878_v35 = vsel %vm2002_vm15, %v877_v14, %v2391_v34  ;;  %v2460_v15 = vand.u32 2147483647, %v2459_v5  ;;  %v2466_v34 = vld [vmem:[#allocation33_spill] sm:$0xff] }
 0x309   :  { %v901_v53 = vor.u32 %v2455_v61, %v2454_v60  ;;  %v2461_v57 = vand.u32 2147483648, %v2422_v49  ;;  %v2463_v47 = vand.u32 2147483647, %v2462_v0  ;;  %v2464_v36 = vand.u32 2147483648, %v2426_v30 }
 0x30a   :  { %v909_v2 = vor.u32 %v2458_v1, %v2457_v45  ;;  %v575_v6 = vpack.c.bf16 %v814_v13, %v806_v39  ;;  %v886_v21 = vsel %vm2017_vm14, %v885_v25, %v2398_v23  ;;  %v2465_v10 = vand.u32 2147483648, %v2431_v32  ;;  %v2470_v13 = vld [vmem:[#allocation35_spill] sm:$0xff]  ;;  %590 = vst [vmem:[#allocation8 + $0x28] sm:$0xff] %v574_v43 }
 0x30b   :  { %v917_v62 = vor.u32 %v2461_v57, %v2460_v15  ;;  %v925_v46 = vor.u32 %v2464_v36, %v2463_v47  ;;  %v2467_v14 = vand.u32 2147483648, %v2466_v34  ;;  %v576_v27 = vpack.c.bf16 %v830_v38, %v822_v52 }
 0x30c   :  { %v933_v50 = vor.u32 %v2465_v10, %v931_v19  ;;  %v894_v33 = vsel %vm2035_vm1, %v893_v63, %v2405_v51  ;;  %v2469_v28 = vand.u32 2147483648, %v2468_v58  ;;  %v2471_v16 = vand.u32 2147483648, %v2470_v13  ;;  %591 = vst [vmem:[#allocation8 + $0x30] sm:$0xff] %v575_v6 }
 0x30d   :  { %v941_v40 = vor.u32 %v2467_v14, %v939_v55  ;;  %v577_v18 = vpack.c.bf16 %v846_v29, %v838_v56  ;;  %v2472_v23 = vand.u32 2147483647, %v2466_v34  ;;  %v902_v55 = vsel %vm2051_vm2, %v901_v53, %v2412_v42  ;;  %592 = vst [vmem:[#allocation8 + $0x38] sm:$0xff] %v576_v27 }
 0x30e   :  { %v949_v39 = vor.u32 %v2469_v28, %v947_v48  ;;  %v957_v17 = vor.u32 %v2471_v16, %v955_v24  ;;  %v910_v51 = vsel %vm2057_vm3, %v909_v2, %v2416_v54  ;;  %v578_v48 = vpack.c.bf16 %v862_v26, %v854_v41 }
 0x30f   :  { %vm2165_vm10 = vcmp.lt.f32.partialorder %v2472_v23, 8388608.0  ;;  %v2475_v24 = vand.u32 2147483647, %v2468_v58  ;;  %v918_v52 = vsel %vm2073_vm4, %v917_v62, %v2422_v49  ;;  %v926_v42 = vsel %vm2079_vm5, %v925_v46, %v2426_v30  ;;  %593 = vst [vmem:[#allocation8 + $0x40] sm:$0xff] %v577_v18 }
 0x310   :  { %v579_v4 = vpack.c.bf16 %v878_v35, %v870_v8  ;;  %v2478_v54 = vand.u32 2147483647, %v2470_v13  ;;  %v934_v38 = vsel %vm2096_vm6, %v933_v50, %v2431_v32  ;;  %v942_v49 = vsel %vm2165_vm10, %v941_v40, %v2466_v34  ;;  %594 = vst [vmem:[#allocation8 + $0x48] sm:$0xff] %v578_v48 }
 0x311   :  { %vm2177_vm11 = vcmp.lt.f32.partialorder %v2475_v24, 8388608.0  ;;  %v580_v7 = vpack.c.bf16 %v894_v33, %v886_v21  ;;  %v581_v56 = vpack.c.bf16 %v910_v51, %v902_v55  ;;  %v582_v29 = vpack.c.bf16 %v926_v42, %v918_v52 }
 0x312   :  { %vm2189_vm12 = vcmp.lt.f32.partialorder %v2478_v54, 8388608.0  ;;  %v950_v30 = vsel %vm2177_vm11, %v949_v39, %v2468_v58  ;;  %v583_v59 = vpack.c.bf16 %v942_v49, %v934_v38  ;;  %595 = vst [vmem:[#allocation8 + $0x50] sm:$0xff] %v579_v4 }
 0x313   :  { %v958_v12 = vsel %vm2189_vm12, %v957_v17, %v2470_v13  ;;  %596 = vst [vmem:[#allocation8 + $0x58] sm:$0xff] %v580_v7 }
 0x314   :  { %v584_v32 = vpack.c.bf16 %v958_v12, %v950_v30  ;;  %597 = vst [vmem:[#allocation8 + $0x60] sm:$0xff] %v581_v56 }
 0x315   :  { %598 = vst [vmem:[#allocation8 + $0x68] sm:$0xff] %v582_v29 }
 0x316   :  { %599 = vst [vmem:[#allocation8 + $0x70] sm:$0xff] %v583_v59 }
 0x317   :  { %600 = vst [vmem:[#allocation8 + $0x78] sm:$0xff] %v584_v32 }
 0x318   :  { %623 = dma.vmem_to_hbm [thread:$0]  %s616_s21, 2048, %s618_s23, [#allocation5], %s1162_s17, %s1162_s17, %s1163_s18  }
 0x319   :  { %1155 = dma.done.wait [#allocation5], 2048  }
 0x31a   :  { %1156 = vsyncadd [#allocation5], 4294965248 }
 0x31b   :  { %1157 = dma.done.wait [#allocation10], 64  }
 0x31c   :  { %1158 = vsyncadd [#allocation10], 4294967232 }
 0x31d   :  { %1159 = dma.done.wait [#allocation13], 32  }
 0x31e   :  { %1160 = vsyncadd [#allocation13], 4294967264 }
 0x31f   :  { %688 = vsyncpa [#allocation4], 1 }
 0x320   :  { %689 = vsyncpa [#allocation7], 1 }
 0x321   :  { %690 = vsyncpa [#allocation5], 1 }
 0x322   :  { %691 = vsyncpa [#allocation10], 1 }
 0x323   :  { %692 = vsyncpa [#allocation13], 1 }

</bundles_post_ra>
